<compile_context>
chip_gen: v6e
topology: v6e:2x2x1
jax: 0.10.0
libtpu: 0.0.40
codegen_flags: <defaults>
</compile_context>

<pallas_src>
import functools
import math

import jax
import jax.numpy as jnp
from jax.experimental import pallas as pl
from jax.experimental.pallas import tpu as pltpu

_LN_EPS = 1e-5
_MASK_NEG = -1e30  # finite (avoids -inf/NaN on fully-masked rows)


# ---------------------------------------------------------------------------
# small helpers
# ---------------------------------------------------------------------------
def _device_vmem_bytes() -> int:
    try:
        return int(pltpu.get_tpu_info().vmem_capacity_bytes)
    except Exception:
        return 64 * 1024 * 1024


def _row_tile(rows: int, target: int) -> int:
    """Row (sublane) tile: full array if it fits, else a multiple-of-8 tile."""
    if rows <= target:
        return rows
    return (target // 8) * 8


def _col_tile(cols: int, target: int = 2048) -> int:
    """Output-feature (lane) tile: full array if it fits, else a 128-multiple."""
    if cols <= target:
        return cols
    return (target // 128) * 128


def _erf_approx(x):
    # Abramowitz & Stegun 7.1.26 (max abs err ~1.5e-7) — f32-exact for our use and
    # built only from Mosaic-safe primitives (abs / exp / mul / div / where).
    a1, a2, a3, a4, a5 = (0.254829592, -0.284496736, 1.421413741,
                          -1.453152027, 1.061405429)
    p = 0.3275911
    ax = jnp.abs(x)
    t = 1.0 / (1.0 + p * ax)
    poly = ((((a5 * t + a4) * t + a3) * t + a2) * t + a1) * t
    y = 1.0 - poly * jnp.exp(-ax * ax)
    return jnp.where(x >= 0, y, -y)


def _gelu_exact(x):
    # PyTorch F.gelu default (erf form).
    return 0.5 * x * (1.0 + _erf_approx(x * 0.7071067811865476))


# ---------------------------------------------------------------------------
# kernels
# ---------------------------------------------------------------------------
def _ln_linear_kernel(*refs, eps, cd, has_bias):
    # o = LayerNorm(x) @ w (+ b)          x:(tr,din)  w:(din,tc)  b:(1,tc)
    if has_bias:
        x_ref, g_ref, bta_ref, w_ref, b_ref, o_ref = refs
    else:
        x_ref, g_ref, bta_ref, w_ref, o_ref = refs
    f32 = jnp.float32
    x = x_ref[...].astype(f32)
    mu = jnp.mean(x, axis=-1, keepdims=True)
    xc = x - mu
    var = jnp.mean(xc * xc, axis=-1, keepdims=True)
    y = xc * jax.lax.rsqrt(var + eps) * g_ref[...].astype(f32) + bta_ref[...].astype(f32)
    acc = jnp.dot(y.astype(cd), w_ref[...], preferred_element_type=f32)
    if has_bias:
        acc = acc + b_ref[...].astype(f32)
    o_ref[...] = acc.astype(o_ref.dtype)


def _proj_ln_kv_kernel(x_ref, w1_ref, b1_ref, g_ref, bta_ref, w2_ref, o_ref, *, eps, cd):
    # o = LayerNorm(x @ w1 + b1) @ w2      (context / visual-token -> K|V, fused)
    f32 = jnp.float32
    h = jnp.dot(x_ref[...].astype(cd), w1_ref[...], preferred_element_type=f32)
    h = h + b1_ref[...].astype(f32)
    mu = jnp.mean(h, axis=-1, keepdims=True)
    hc = h - mu
    var = jnp.mean(hc * hc, axis=-1, keepdims=True)
    y = hc * jax.lax.rsqrt(var + eps) * g_ref[...].astype(f32) + bta_ref[...].astype(f32)
    acc = jnp.dot(y.astype(cd), w2_ref[...], preferred_element_type=f32)
    o_ref[...] = acc.astype(o_ref.dtype)


def _attention_out_kernel(*refs, n_heads, d_head, scale, cd, use_bias, approx_recip):
    # One (batch, q-tile) step: for every head, online-softmax attention over the
    # three key/value segments [x | visual | context], then fused to_out GEMM and
    # tanh(alpha_attn)-gated residual:  o = x + g * (attn @ W_out + b_out).
    if use_bias:
        bias_ref = refs[0]
        refs = refs[1:]
    gate_ref, q_ref, kvx_ref, kvv_ref, kvc_ref, xr_ref, wo_ref, bo_ref, o_ref = refs
    f32 = jnp.float32
    inner = n_heads * d_head
    tq = q_ref.shape[1]
    dout = o_ref.shape[2]
    g = gate_ref[0, 0]
    bias = bias_ref[0].astype(f32) if use_bias else None        # (1, Lc) key bias

    acc = jnp.zeros((tq, dout), f32)
    for h in range(n_heads):
        lo = h * d_head
        q_h = q_ref[0, :, lo:lo + d_head].astype(cd)             # (tq, dh)
        m = jnp.full((tq, 1), -jnp.inf, f32)
        l = jnp.zeros((tq, 1), f32)
        o = jnp.zeros((tq, d_head), f32)
        for seg_ref, seg_bias in ((kvx_ref, None), (kvv_ref, None), (kvc_ref, bias)):
            k_h = seg_ref[0, :, lo:lo + d_head].astype(cd)                   # (Ls, dh)
            v_h = seg_ref[0, :, inner + lo:inner + lo + d_head].astype(cd)   # (Ls, dh)
            s = jax.lax.dot_general(q_h, k_h, (((1,), (1,)), ((), ())),
                                    preferred_element_type=f32) * scale
            if seg_bias is not None:
                s = s + seg_bias
            m_new = jnp.maximum(m, jnp.max(s, axis=-1, keepdims=True))
            alpha = jnp.exp(m - m_new)
            p = jnp.exp(s - m_new)
            l = alpha * l + jnp.sum(p, axis=-1, keepdims=True)
            o = alpha * o + jnp.dot(p.astype(cd), v_h, preferred_element_type=f32)
            m = m_new
        o = o * pl.reciprocal(l, approx=approx_recip)
        acc = acc + jnp.dot(o.astype(cd), wo_ref[lo:lo + d_head, :],
                            preferred_element_type=f32)
    out = xr_ref[0].astype(f32) + g * (acc + bo_ref[...].astype(f32))
    o_ref[0] = out.astype(o_ref.dtype)


def _geglu_ff_kernel(gate_ref, res_ref, y_ref, w_ref, b_ref, o_ref, *, cd):
    # o = res + g * ((val * gelu(gate_half)) @ w + b)   y:(tr, 2F) w:(F, tc)
    f32 = jnp.float32
    g = gate_ref[0, 0]
    y = y_ref[...]
    fdim = y.shape[-1] // 2
    val = y[:, :fdim].astype(f32)
    gt = y[:, fdim:].astype(f32)
    hidden = (val * _gelu_exact(gt)).astype(cd)
    acc = jnp.dot(hidden, w_ref[...], preferred_element_type=f32)
    out = res_ref[...].astype(f32) + g * (acc + b_ref[...].astype(f32))
    o_ref[...] = out.astype(o_ref.dtype)


# ---------------------------------------------------------------------------
# Module (forward-pass equivalent of the PyTorch nn.Module, eval mode)
# ---------------------------------------------------------------------------
class MergeGatedSelfAttention:
    def __init__(self, query_dim, context_dim, n_heads, d_head, *, key,
                 mxu_dtype=jnp.bfloat16):
        self.query_dim = query_dim
        self.context_dim = context_dim
        self.n_heads = n_heads
        self.d_head = d_head
        self.inner = n_heads * d_head
        self.ff_inner = 4 * query_dim
        self.attn_scale = d_head ** (-0.5)
        self.scale = 1.0
        self.eps = _LN_EPS
        self.mxu_dtype = mxu_dtype
        self.is_bf16 = (mxu_dtype == jnp.bfloat16)
        self.act_dtype = jnp.bfloat16 if self.is_bf16 else jnp.float32

        cap = _device_vmem_bytes()
        self.vmem_limit = max(32 * 1024 * 1024, int(cap * 0.85))
        self.row_target = 512 if cap >= 100 * 1024 * 1024 else 256   # v7x: 64 MiB

        ks = iter(jax.random.split(key, 24))
        f32 = jnp.float32

        def lin_w(din, dout):
            bound = 1.0 / math.sqrt(din)
            return jax.random.uniform(next(ks), (din, dout), f32, -bound, bound)

        def lin_b(din, dout):
            bound = 1.0 / math.sqrt(din)
            return jax.random.uniform(next(ks), (1, dout), f32, -bound, bound)

        cd = mxu_dtype
        # context / visual-token projections (Linear layers of the torch module)
        self.w_ctx = lin_w(context_dim, query_dim).astype(cd)
        self.b_ctx = lin_b(context_dim, query_dim)
        self.w_vis = lin_w(context_dim, query_dim).astype(cd)
        self.b_vis = lin_b(context_dim, query_dim)
        # LayerNorms
        self.ln1_g = jnp.ones((1, query_dim), f32)
        self.ln1_b = jnp.zeros((1, query_dim), f32)
        self.ln2_g = jnp.ones((1, query_dim), f32)
        self.ln2_b = jnp.zeros((1, query_dim), f32)
        # CrossAttention: to_q (bias-free), to_k|to_v fused (bias-free), to_out
        self.w_q = lin_w(query_dim, self.inner).astype(cd)
        wk = lin_w(query_dim, self.inner)
        wv = lin_w(query_dim, self.inner)
        self.w_kv = jnp.concatenate([wk, wv], axis=1).astype(cd)
        self.w_out = lin_w(self.inner, query_dim).astype(cd)
        self.b_out = lin_b(self.inner, query_dim)
        # FeedForward (GEGLU): proj -> (value | gate), then Linear back
        self.w_geglu = lin_w(query_dim, 2 * self.ff_inner).astype(cd)
        self.b_geglu = lin_b(query_dim, 2 * self.ff_inner)
        self.w_ff2 = lin_w(self.ff_inner, query_dim).astype(cd)
        self.b_ff2 = lin_b(self.ff_inner, query_dim)
        # gating parameters (PyTorch init: 0.0)
        self.alpha_attn = jnp.zeros((), f32)
        self.alpha_dense = jnp.zeros((), f32)

    # ---- pallas_call wrappers ------------------------------------------------
    def _ln_linear(self, x2d, gamma, beta, w, b, out_dtype):
        rows, din = x2d.shape
        dout = w.shape[1]
        tr = _row_tile(rows, self.row_target)
        tc = _col_tile(dout)
        has_bias = b is not None
        kernel = functools.partial(_ln_linear_kernel, eps=self.eps,
                                   cd=self.mxu_dtype, has_bias=has_bias)
        in_specs = [pl.BlockSpec((tr, din), lambda j, i: (i, 0)),
                    pl.BlockSpec((1, din), lambda j, i: (0, 0)),
                    pl.BlockSpec((1, din), lambda j, i: (0, 0)),
                    pl.BlockSpec((din, tc), lambda j, i: (0, j))]
        args = [x2d, gamma, beta, w]
        if has_bias:
            in_specs.append(pl.BlockSpec((1, tc), lambda j, i: (0, j)))
            args.append(b)
        return pl.pallas_call(
            kernel,
            out_shape=jax.ShapeDtypeStruct((rows, dout), out_dtype),
            grid_spec=pltpu.PrefetchScalarGridSpec(
                num_scalar_prefetch=0,
                grid=(pl.cdiv(dout, tc), pl.cdiv(rows, tr)),   # row axis innermost
                in_specs=in_specs,
                out_specs=pl.BlockSpec((tr, tc), lambda j, i: (i, j))),
            compiler_params=pltpu.CompilerParams(
                dimension_semantics=("parallel", "parallel"),
                vmem_limit_bytes=self.vmem_limit),
        )(*args)

    def _proj_ln_kv(self, x2d, w1, b1, out_dtype):
        rows, din = x2d.shape
        mid = w1.shape[1]
        dout = self.w_kv.shape[1]
        tr = _row_tile(rows, self.row_target)
        kernel = functools.partial(_proj_ln_kv_kernel, eps=self.eps, cd=self.mxu_dtype)
        return pl.pallas_call(
            kernel,
            out_shape=jax.ShapeDtypeStruct((rows, dout), out_dtype),
            grid_spec=pltpu.PrefetchScalarGridSpec(
                num_scalar_prefetch=0, grid=(pl.cdiv(rows, tr),),
                in_specs=[pl.BlockSpec((tr, din), lambda i: (i, 0)),
                          pl.BlockSpec((din, mid), lambda i: (0, 0)),
                          pl.BlockSpec((1, mid), lambda i: (0, 0)),
                          pl.BlockSpec((1, mid), lambda i: (0, 0)),
                          pl.BlockSpec((1, mid), lambda i: (0, 0)),
                          pl.BlockSpec((mid, dout), lambda i: (0, 0))],
                out_specs=pl.BlockSpec((tr, dout), lambda i: (i, 0))),
            compiler_params=pltpu.CompilerParams(
                dimension_semantics=("parallel",),
                vmem_limit_bytes=self.vmem_limit),
        )(x2d, w1, b1, self.ln1_g, self.ln1_b, self.w_kv)

    def _attention_out(self, q, kv_x, kv_v, kv_c, bias, x_res, gate):
        B, Lx, inner = q.shape
        D = x_res.shape[-1]
        Lv, Lc = kv_v.shape[1], kv_c.shape[1]
        tq = _row_tile(Lx, self.row_target)
        use_bias = bias is not None
        kernel = functools.partial(
            _attention_out_kernel, n_heads=self.n_heads, d_head=self.d_head,
            scale=self.attn_scale, cd=self.mxu_dtype, use_bias=use_bias,
            approx_recip=self.is_bf16)
        in_specs = []
        args = []
        if use_bias:
            in_specs.append(pl.BlockSpec((1, 1, Lc), lambda b, qi: (b, 0, 0)))
            args.append(bias)
        in_specs += [
            pl.BlockSpec(memory_space=pltpu.MemorySpace.SMEM),            # gate (1,1)
            pl.BlockSpec((1, tq, inner), lambda b, qi: (b, qi, 0)),       # q
            pl.BlockSpec((1, Lx, 2 * inner), lambda b, qi: (b, 0, 0)),    # kv (x rows)
            pl.BlockSpec((1, Lv, 2 * inner), lambda b, qi: (b, 0, 0)),    # kv (visual)
            pl.BlockSpec((1, Lc, 2 * inner), lambda b, qi: (b, 0, 0)),    # kv (context)
            pl.BlockSpec((1, tq, D), lambda b, qi: (b, qi, 0)),           # residual x
            pl.BlockSpec((inner, D), lambda b, qi: (0, 0)),               # w_out
            pl.BlockSpec((1, D), lambda b, qi: (0, 0)),                   # b_out
        ]
        args += [gate, q, kv_x, kv_v, kv_c, x_res, self.w_out, self.b_out]
        return pl.pallas_call(
            kernel,
            out_shape=jax.ShapeDtypeStruct((B, Lx, D), x_res.dtype),
            grid_spec=pltpu.PrefetchScalarGridSpec(
                num_scalar_prefetch=0, grid=(B, pl.cdiv(Lx, tq)),
                in_specs=in_specs,
                out_specs=pl.BlockSpec((1, tq, D), lambda b, qi: (b, qi, 0))),
            compiler_params=pltpu.CompilerParams(
                dimension_semantics=("parallel", "parallel"),
                vmem_limit_bytes=self.vmem_limit),
        )(*args)

    def _geglu_ff(self, gate, res2d, y2d, w, b, out_dtype):
        rows, din2 = y2d.shape
        fdim, dout = w.shape
        tr = _row_tile(rows, self.row_target)
        tc = _col_tile(dout)
        kernel = functools.partial(_geglu_ff_kernel, cd=self.mxu_dtype)
        return pl.pallas_call(
            kernel,
            out_shape=jax.ShapeDtypeStruct((rows, dout), out_dtype),
            grid_spec=pltpu.PrefetchScalarGridSpec(
                num_scalar_prefetch=0,
                grid=(pl.cdiv(dout, tc), pl.cdiv(rows, tr)),
                in_specs=[pl.BlockSpec(memory_space=pltpu.MemorySpace.SMEM),
                          pl.BlockSpec((tr, tc), lambda j, i: (i, j)),    # residual
                          pl.BlockSpec((tr, din2), lambda j, i: (i, 0)),  # GEGLU proj out
                          pl.BlockSpec((fdim, tc), lambda j, i: (0, j)),
                          pl.BlockSpec((1, tc), lambda j, i: (0, j))],
                out_specs=pl.BlockSpec((tr, tc), lambda j, i: (i, j))),
            compiler_params=pltpu.CompilerParams(
                dimension_semantics=("parallel", "parallel"),
                vmem_limit_bytes=self.vmem_limit),
        )(gate, res2d, y2d, w, b)

    # ---- Pallas forward -------------------------------------------------------
    def __call__(self, x, context, mask, visual_tokens):
        B, Lx, D = x.shape
        Lv = visual_tokens.shape[1]
        Lc = context.shape[1]
        f32 = jnp.float32
        adt = self.act_dtype
        x2d = x.reshape(B * Lx, D)

        # 1) x rows only: LayerNorm1 -> Q and LayerNorm1 -> (K|V)
        q_x = self._ln_linear(x2d, self.ln1_g, self.ln1_b, self.w_q, None,
                              adt).reshape(B, Lx, self.inner)
        kv_x = self._ln_linear(x2d, self.ln1_g, self.ln1_b, self.w_kv, None,
                               adt).reshape(B, Lx, 2 * self.inner)
        # 2) visual / text tokens: Linear -> LayerNorm1 -> (K|V) (keys/values only —
        #    their query rows are discarded by the reference, so never computed).
        kv_v = self._proj_ln_kv(visual_tokens.reshape(B * Lv, self.context_dim),
                                self.w_vis, self.b_vis, adt).reshape(B, Lv, 2 * self.inner)
        kv_c = self._proj_ln_kv(context.reshape(B * Lc, self.context_dim),
                                self.w_ctx, self.b_ctx, adt).reshape(B, Lc, 2 * self.inner)

        # 3) key mask -> additive bias over the context keys only (x/visual keys are
        #    always attended); skipped entirely when mask is None.
        bias = None
        if mask is not None:
            bias = jnp.where(mask != 0, 0.0, _MASK_NEG).astype(f32)[:, None, :]

        # 4) attention + fused to_out + gated residual  ->  x1  (B, Lx, D)
        gate_a = (self.scale * jnp.tanh(self.alpha_attn)).astype(f32).reshape(1, 1)
        x1 = self._attention_out(q_x, kv_x, kv_v, kv_c, bias, x, gate_a)

        # 5) LayerNorm2 -> GEGLU projection, then fused GELU-gate + ff2 + residual.
        y = self._ln_linear(x1.reshape(B * Lx, D), self.ln2_g, self.ln2_b,
                            self.w_geglu, self.b_geglu, adt)
        gate_d = (self.scale * jnp.tanh(self.alpha_dense)).astype(f32).reshape(1, 1)
        x2 = self._geglu_ff(gate_d, x1.reshape(B * Lx, D), y, self.w_ff2,
                            self.b_ff2, x.dtype)
        return x2.reshape(B, Lx, D)

    # ---- pure-JAX reference (no Pallas) for correctness checking ---------------
    def reference(self, x, context, mask, visual_tokens):
        f32 = jnp.float32
        B, Lx, D = x.shape
        H, dh = self.n_heads, self.d_head
        w = lambda a: a.astype(f32)

        ctx = context @ w(self.w_ctx) + self.b_ctx
        vis = visual_tokens @ w(self.w_vis) + self.b_vis
        h = jnp.concatenate([x, vis, ctx], axis=1)
        L = h.shape[1]

        def ln(z, g, b):
            mu = jnp.mean(z, axis=-1, keepdims=True)
            var = jnp.mean((z - mu) ** 2, axis=-1, keepdims=True)
            return (z - mu) * jax.lax.rsqrt(var + self.eps) * g + b

        n1 = ln(h, self.ln1_g, self.ln1_b)
        q = (n1 @ w(self.w_q)).reshape(B, L, H, dh).transpose(0, 2, 1, 3)
        kv = n1 @ w(self.w_kv)
        k = kv[..., :self.inner].reshape(B, L, H, dh).transpose(0, 2, 1, 3)
        v = kv[..., self.inner:].reshape(B, L, H, dh).transpose(0, 2, 1, 3)
        s = jnp.einsum('bhid,bhjd->bhij', q, k) * self.attn_scale
        if mask is not None:
            keep = jnp.concatenate(
                [jnp.ones((B, L - mask.shape[1]), mask.dtype), mask], axis=1)
            s = jnp.where((keep != 0)[:, None, None, :], s, _MASK_NEG)
        p = jax.nn.softmax(s, axis=-1)
        o = jnp.einsum('bhij,bhjd->bhid', p, v).transpose(0, 2, 1, 3).reshape(B, L, self.inner)
        o = o @ w(self.w_out) + self.b_out
        x1 = x + self.scale * jnp.tanh(self.alpha_attn) * o[:, :Lx]
        n2 = ln(x1, self.ln2_g, self.ln2_b)
        y = n2 @ w(self.w_geglu) + self.b_geglu
        val, gate = jnp.split(y, 2, axis=-1)
        ff = (val * jax.nn.gelu(gate, approximate=False)) @ w(self.w_ff2) + self.b_ff2
        return x1 + self.scale * jnp.tanh(self.alpha_dense) * ff


# ---------------------------------------------------------------------------
if __name__ == "__main__":
    key = jax.random.PRNGKey(0)
    k_param, k_x, k_ctx, k_vis, k_mask = jax.random.split(key, 5)

    B, Lx, Lv, Lc = 2, 16, 5, 7
    query_dim, context_dim, n_heads, d_head = 64, 96, 2, 32

    x = jax.random.normal(k_x, (B, Lx, query_dim), jnp.float32)
    context = jax.random.normal(k_ctx, (B, Lc, context_dim), jnp.float32)
    visual = jax.random.normal(k_vis, (B, Lv, context_dim), jnp.float32)
    mask = (jax.random.uniform(k_mask, (B, Lc)) > 0.4).astype(jnp.float32)
    mask = mask.at[0, 0].set(0.0).at[0, 1].set(1.0)   # exercise both mask branches

    # ---- exact f32-MXU variant (matches the PyTorch f32 module tightly) -------
    m32 = MergeGatedSelfAttention(query_dim, context_dim, n_heads, d_head,
                                  key=k_param, mxu_dtype=jnp.float32)
    # alpha_* init to 0 (tanh(0)=0) would zero the gated branches; set nonzero so
    # the smoke test exercises the full data path.
    m32.alpha_attn = jnp.asarray(0.7, jnp.float32)
    m32.alpha_dense = jnp.asarray(-0.4, jnp.float32)

    out = m32(x, context, mask, visual)
    jax.block_until_ready(out)
    ref = m32.reference(x, context, mask, visual)
    assert out.shape == (B, Lx, query_dim)
    err = float(jnp.abs(out - ref).max())
    assert jnp.allclose(out, ref, atol=2e-3, rtol=2e-3), f"f32 masked mismatch {err}"

    out_nm = m32(x, context, None, visual)
    jax.block_until_ready(out_nm)
    ref_nm = m32.reference(x, context, None, visual)
    err = float(jnp.abs(out_nm - ref_nm).max())
    assert jnp.allclose(out_nm, ref_nm, atol=2e-3, rtol=2e-3), f"f32 unmasked mismatch {err}"

    # ---- default bf16-MXU fast path (f32 accumulation), looser tolerance ------
    mbf = MergeGatedSelfAttention(query_dim, context_dim, n_heads, d_head, key=k_param)
    mbf.alpha_attn = jnp.asarray(0.7, jnp.float32)
    mbf.alpha_dense = jnp.asarray(-0.4, jnp.float32)
    outb = mbf(x, context, mask, visual)
    jax.block_until_ready(outb)
    refb = mbf.reference(x, context, mask, visual)
    errb = float(jnp.abs(outb - refb).max())
    assert jnp.allclose(outb, refb, atol=4e-2, rtol=4e-2), f"bf16 mismatch {errb}"

    print("KERNEL_OK")
</pallas_src>

<mosaic_0001>
module attributes {stable_mosaic.version = 11 : i64} {
  func.func @_ln_linear_kernel(%arg0: i32, %arg1: i32, %arg2: memref<32x64xf32, #tpu.memory_space<vmem>>, %arg3: memref<1x64xf32, #tpu.memory_space<vmem>>, %arg4: memref<1x64xf32, #tpu.memory_space<vmem>>, %arg5: memref<64x64xf32, #tpu.memory_space<vmem>>, %arg6: memref<32x64xf32, #tpu.memory_space<vmem>>) attributes {dimension_semantics = [#tpu.dimension_semantics<parallel>, #tpu.dimension_semantics<parallel>], iteration_bounds = array<i64: 1, 1>, scalar_prefetch = 0 : i64, scratch_operands = 0 : i64, tpu.core_type = #tpu.core_type<tc>, window_params = [{transform_indices = @transform_0, window_bounds = array<i64: 32, 64>}, {pipeline_mode = #tpu.pipeline_mode<synchronous>, transform_indices = @transform_1, window_bounds = array<i64: 1, 64>}, {pipeline_mode = #tpu.pipeline_mode<synchronous>, transform_indices = @transform_2, window_bounds = array<i64: 1, 64>}, {transform_indices = @transform_3, window_bounds = array<i64: 64, 64>}, {transform_indices = @transform_4, window_bounds = array<i64: 32, 64>}]} {
    %c0 = arith.constant 0 : index
    %c0_0 = arith.constant 0 : index
    %0 = vector.load %arg2[%c0, %c0_0] : memref<32x64xf32, #tpu.memory_space<vmem>>, vector<32x64xf32>
    %cst = arith.constant dense<0.000000e+00> : vector<32xf32>
    %1 = vector.multi_reduction <add>, %0, %cst [1] : vector<32x64xf32> to vector<32xf32>
    %2 = vector.shape_cast %1 : vector<32xf32> to vector<32x1xf32>
    %cst_1 = arith.constant 6.400000e+01 : f32
    %3 = vector.broadcast %cst_1 : f32 to vector<32x1xf32>
    %4 = arith.divf %2, %3 : vector<32x1xf32>
    %5 = vector.broadcast %4 : vector<32x1xf32> to vector<32x64xf32>
    %6 = arith.subf %0, %5 : vector<32x64xf32>
    %7 = arith.mulf %6, %6 : vector<32x64xf32>
    %cst_2 = arith.constant dense<0.000000e+00> : vector<32xf32>
    %8 = vector.multi_reduction <add>, %7, %cst_2 [1] : vector<32x64xf32> to vector<32xf32>
    %9 = vector.shape_cast %8 : vector<32xf32> to vector<32x1xf32>
    %cst_3 = arith.constant 6.400000e+01 : f32
    %10 = vector.broadcast %cst_3 : f32 to vector<32x1xf32>
    %11 = arith.divf %9, %10 : vector<32x1xf32>
    %cst_4 = arith.constant 9.99999974E-6 : f32
    %12 = vector.broadcast %cst_4 : f32 to vector<32x1xf32>
    %13 = arith.addf %11, %12 : vector<32x1xf32>
    %14 = math.rsqrt %13 : vector<32x1xf32>
    %15 = vector.broadcast %14 : vector<32x1xf32> to vector<32x64xf32>
    %16 = arith.mulf %6, %15 : vector<32x64xf32>
    %c0_5 = arith.constant 0 : index
    %c0_6 = arith.constant 0 : index
    %17 = vector.load %arg3[%c0_5, %c0_6] : memref<1x64xf32, #tpu.memory_space<vmem>>, vector<1x64xf32>
    %18 = vector.broadcast %17 : vector<1x64xf32> to vector<32x64xf32>
    %19 = arith.mulf %16, %18 : vector<32x64xf32>
    %c0_7 = arith.constant 0 : index
    %c0_8 = arith.constant 0 : index
    %20 = vector.load %arg4[%c0_7, %c0_8] : memref<1x64xf32, #tpu.memory_space<vmem>>, vector<1x64xf32>
    %21 = vector.broadcast %20 : vector<1x64xf32> to vector<32x64xf32>
    %22 = arith.addf %19, %21 : vector<32x64xf32>
    %c0_9 = arith.constant 0 : index
    %c0_10 = arith.constant 0 : index
    %23 = vector.load %arg5[%c0_9, %c0_10] : memref<64x64xf32, #tpu.memory_space<vmem>>, vector<64x64xf32>
    %cst_11 = arith.constant dense<0.000000e+00> : vector<32x64xf32>
    %24 = tpu.matmul %22, %23, %cst_11 {dimension_numbers = #tpu.dot_dimension_numbers<[1], [0], [0], [1], [0, 0, 1, 1], [], []>} : vector<32x64xf32>, vector<64x64xf32>, vector<32x64xf32> -> vector<32x64xf32>
    %c0_12 = arith.constant 0 : index
    %c0_13 = arith.constant 0 : index
    %25 = vector.load %arg6[%c0_12, %c0_13] : memref<32x64xf32, #tpu.memory_space<vmem>>, vector<32x64xf32>
    tpu.vector_store %arg6[%c0_12, %c0_13], %24 {strides = array<i32>} : memref<32x64xf32, #tpu.memory_space<vmem>>, vector<32x64xf32>,
    return
  }
  func.func @transform_0(%arg0: i32, %arg1: i32) -> (i32, i32) {
    %c0_i32 = arith.constant 0 : i32
    %c0_i32_0 = arith.constant 0 : i32
    return %arg1, %c0_i32 : i32, i32
  }
  func.func @transform_1(%arg0: i32, %arg1: i32) -> (i32, i32) {
    %c0_i32 = arith.constant 0 : i32
    %c0_i32_0 = arith.constant 0 : i32
    %c0_i32_1 = arith.constant 0 : i32
    return %c0_i32, %c0_i32_0 : i32, i32
  }
  func.func @transform_2(%arg0: i32, %arg1: i32) -> (i32, i32) {
    %c0_i32 = arith.constant 0 : i32
    %c0_i32_0 = arith.constant 0 : i32
    %c0_i32_1 = arith.constant 0 : i32
    return %c0_i32, %c0_i32_0 : i32, i32
  }
  func.func @transform_3(%arg0: i32, %arg1: i32) -> (i32, i32) {
    %c0_i32 = arith.constant 0 : i32
    %c0_i32_0 = arith.constant 0 : i32
    return %c0_i32, %arg0 : i32, i32
  }
  func.func @transform_4(%arg0: i32, %arg1: i32) -> (i32, i32) {
    %c0_i32 = arith.constant 0 : i32
    return %arg1, %arg0 : i32, i32
  }
}

</mosaic_0001>

<bundles_post_ra>
// kernel: tpu_custom_call.1
= control target key start
LH: loop header
LB: loop body
LE: loop exit
PB: predicated region body
PF: predicated region fallthrough
CT: control target
= control target key end

     0   :  { %9 = vsyncpa [#allocation3], 0  ;;  %s478_s0 = inlined_call_operand.hbm [shape: f32[32,64], index: 0, kind: input, shape index: {}]   ;;  %s479_s1 = inlined_call_operand.vmem [shape: f32[1,64], index: 1, kind: input, shape index: {}]   ;;  %s480_s2 = inlined_call_operand.vmem [shape: f32[1,64], index: 2, kind: input, shape index: {}]   ;;  %s481_s3 = inlined_call_operand.hbm [shape: f32[64,64], index: 3, kind: input, shape index: {}]   ;;  %s482_s4 = inlined_call_operand.hbm [shape: f32[32,64], index: 4, kind: output, shape index: {}]  }
   0x1   :  { %10 = vsyncpa [#allocation6], 0 }
   0x2   :  { %11 = vsyncpa [#allocation4], 0  ;;  %s388_s15 = smov [#allocation2]  }
   0x3   :  { %s17_s16 = sshll.u32 %s388_s15, 4  ;;  %s18_s16 = int_to_ptr.vmem [resolvable:$true] %s17_s16 }
   0x4   :  { %s330_s17 = scalar_lea.vmem %s18_s16, 512  ;;  %p335_p1 = scmp.lt.s32.totalorder %s18_s16, %s18_s16 }
   0x5   :  { %p331_p0 = scmp.ne.s32.totalorder %s18_s16, %s330_s17  ;;  %p336_p2 = scmp.lt.s32.totalorder %s330_s17, %s330_s17 }
   0x7   :  { %p337_p3 = por %p336_p2, %p335_p1 }
   0x9   :  { %p338_p4 = pnand %p337_p3, %p331_p0 }
   0xb   :  { %341 = shalt.err (!%p338_p4)
}
   0xc   :  { %s389_s18 = smov 128   ;;  %s390_s19 = smov 8  }
   0xd   :  { %23 = dma.hbm_to_vmem [thread:$0]  %s478_s0, 512, %s18_s16, [#allocation3], %s389_s18, %s389_s18, %s390_s19  }
   0xe   :  { %s391_s22 = smov [#allocation5]  }
   0xf   :  { %s33_s23 = sshll.u32 %s391_s22, 4  ;;  %s34_s23 = int_to_ptr.vmem [resolvable:$true] %s33_s23 }
  0x10   :  { %s350_s24 = scalar_lea.vmem %s34_s23, 1024  ;;  %p355_p6 = scmp.lt.s32.totalorder %s34_s23, %s34_s23 }
  0x11   :  { %p351_p5 = scmp.ne.s32.totalorder %s34_s23, %s350_s24  ;;  %p356_p7 = scmp.lt.s32.totalorder %s350_s24, %s350_s24 }
  0x13   :  { %p357_p8 = por %p356_p7, %p355_p6 }
  0x15   :  { %p358_p9 = pnand %p357_p8, %p351_p5 }
  0x17   :  { %361 = shalt.err (!%p358_p9)
}
  0x18   :  { %39 = dma.hbm_to_vmem [thread:$0]  %s481_s3, 1024, %s34_s23, [#allocation6], %s389_s18, %s389_s18, %s390_s19  }
  0x19   :  { %382 = dma.done.wait [#allocation3], 512  }
  0x1a   :  { %383 = vsyncadd [#allocation3], 4294966784 }
  0x1b   :  { %384 = dma.done.wait [#allocation6], 1024  }
  0x1c   :  { %385 = vsyncadd [#allocation6], 4294966272  ;;  %vm50_vm0 = vcmask 523264   ;;  %v46_v0 = vld [vmem:[#allocation2] sm:$0xff]  ;;  %v47_v1 = vld [vmem:[#allocation2 + $0x8] sm:$0xff] }
  0x1d   :  { %v48_v2 = vld [vmem:[#allocation2 + $0x10] sm:$0xff]  ;;  %v51_v3 = vsel %vm50_vm0, %v46_v0, 0.0  ;;  %v54_v4 = vsel %vm50_vm0, %v47_v1, 0.0  ;;  %v49_v5 = vld [vmem:[#allocation2 + $0x18] sm:$0xff]  ;;  %v131_v30 = vld [vmem:[#allocation5 + $0x28] sm:$0xff] }
  0x1e   :  { %52 = vadd.xlane.f32.xlu0 %v51_v3  ;;  %55 = vadd.xlane.f32.xlu1 %v54_v4  ;;  %v57_v6 = vsel %vm50_vm0, %v48_v2, 0.0  ;;  %v60_v7 = vsel %vm50_vm0, %v49_v5, 0.0  ;;  %v133_v28 = vld [vmem:[#allocation5 + $0x38] sm:$0xff]  ;;  %v132_v29 = vld [vmem:[#allocation5 + $0x30] sm:$0xff]  ;;  %v130_v31 = vld [vmem:[#allocation5 + $0x20] sm:$0xff] }
  0x1f   :  { %271 = vmatprep.subr.mxu0 %v133_v28  ;;  %293 = vmatprep.subr.mxu1 %v133_v28  ;;  %v129_v32 = vld [vmem:[#allocation5 + $0x18] sm:$0xff]  ;;  %v128_v33 = vld [vmem:[#allocation5 + $0x10] sm:$0xff]  ;;  %v127_v34 = vld [vmem:[#allocation5 + $0x8] sm:$0xff] }
  0x20   :  { %272 = vmatpush3.msra.mxu0 %v133_v28  ;;  %301 = vmatpush3.msra.mxu1 %v133_v28  ;;  %v126_v35 = vld [vmem:[#allocation5] sm:$0xff] }
  0x21   :  { %273 = vmatprep.subr.mxu0 %v132_v29  ;;  %294 = vmatprep.subr.mxu1 %v132_v29  ;;  %v253_v49 = vld [vmem:[%s479_s1] ss:$0 sm:$0xff]  ;;  %s392_s1 = smov [#allocation7]  }
  0x22   :  { %58 = vadd.xlane.f32.xlu0 %v57_v6  ;;  %61 = vadd.xlane.f32.xlu1 %v60_v7  ;;  %v254_v51 = vld [vmem:[%s480_s2] ss:$0 sm:$0xff]  ;;  %s240_s2 = sshll.u32 %s392_s1, 4  ;;  %s241_s2 = int_to_ptr.vmem [resolvable:$true] %s240_s2 }
  0x23   :  { %274 = vmatpush3.msra.mxu0 %v132_v29  ;;  %302 = vmatpush3.msra.mxu1 %v132_v29  ;;  %s362_s29 = scalar_lea.vmem %s241_s2, 512  ;;  %p367_p11 = scmp.lt.s32.totalorder %s241_s2, %s241_s2 }
  0x24   :  { %275 = vmatprep.subr.mxu0 %v131_v30  ;;  %295 = vmatprep.subr.mxu1 %v131_v30  ;;  %p363_p10 = scmp.ne.s32.totalorder %s241_s2, %s362_s29  ;;  %p368_p12 = scmp.lt.s32.totalorder %s362_s29, %s362_s29 }
  0x25   :  { %276 = vmatpush3.msra.mxu0 %v131_v30  ;;  %303 = vmatpush3.msra.mxu1 %v131_v30 }
  0x26   :  { %277 = vmatprep.subr.mxu0 %v130_v31  ;;  %296 = vmatprep.subr.mxu1 %v130_v31  ;;  %p369_p13 = por %p368_p12, %p367_p11 }
  0x27   :  { %278 = vmatpush3.msra.mxu0 %v130_v31  ;;  %304 = vmatpush3.msra.mxu1 %v130_v31 }
  0x28   :  { %279 = vmatprep.subr.mxu0 %v129_v32  ;;  %297 = vmatprep.subr.mxu1 %v129_v32  ;;  %p370_p0 = pnand %p369_p13, %p363_p10 }
  0x29   :  { %280 = vmatpush3.msra.mxu0 %v129_v32  ;;  %305 = vmatpush3.msra.mxu1 %v129_v32 }
  0x2a   :  { %281 = vmatprep.subr.mxu0 %v128_v33  ;;  %298 = vmatprep.subr.mxu1 %v128_v33 }
  0x2b   :  { %282 = vmatpush3.msra.mxu0 %v128_v33  ;;  %306 = vmatpush3.msra.mxu1 %v128_v33 }
  0x2c   :  { %283 = vmatprep.subr.mxu0 %v127_v34  ;;  %299 = vmatprep.subr.mxu1 %v127_v34 }
  0x2d   :  { %284 = vmatpush3.msra.mxu0 %v127_v34  ;;  %307 = vmatpush3.msra.mxu1 %v127_v34 }
  0x2e   :  { %285 = vmatprep.subr.mxu0 %v126_v35  ;;  %300 = vmatprep.subr.mxu1 %v126_v35 }
  0x2f   :  { %286 = vmatpush3.msra.mxu0 %v126_v35  ;;  %308 = vmatpush3.msra.mxu1 %v126_v35 }
  0xa7   :  { %v53_v8 = vpop.xlane.xlu0 %52  ;;  %v56_v9 = vpop.xlane.xlu1 %55 }
  0xa8   :  { %v64_v10 = vmul.f32 0.015625, %v53_v8  ;;  %v65_v11 = vmul.f32 0.015625, %v56_v9 }
  0xaa   :  { %v434_v12 = vsub.f32 %v46_v0, %v64_v10  ;;  %v436_v13 = vsub.f32 %v47_v1, %v65_v11 }
  0xab   :  { %v59_v14 = vpop.xlane.xlu0 %58  ;;  %v62_v15 = vpop.xlane.xlu1 %61 }
  0xac   :  { %v66_v16 = vmul.f32 0.015625, %v59_v14  ;;  %v67_v17 = vmul.f32 0.015625, %v62_v15  ;;  %v72_v18 = vmul.f32 %v434_v12, %v434_v12  ;;  %v73_v19 = vmul.f32 %v436_v13, %v436_v13 }
  0xae   :  { %v442_v20 = vsub.f32 %v48_v2, %v66_v16  ;;  %v444_v21 = vsub.f32 %v49_v5, %v67_v17  ;;  %v76_v22 = vsel %vm50_vm0, %v72_v18, 0.0  ;;  %v79_v23 = vsel %vm50_vm0, %v73_v19, 0.0 }
  0xaf   :  { %77 = vadd.xlane.f32.xlu0 %v76_v22 }
  0xb0   :  { %v74_v24 = vmul.f32 %v442_v20, %v442_v20  ;;  %v75_v25 = vmul.f32 %v444_v21, %v444_v21 }
  0xb2   :  { %v82_v26 = vsel %vm50_vm0, %v74_v24, 0.0  ;;  %v85_v27 = vsel %vm50_vm0, %v75_v25, 0.0 }
  0xb3   :  { %80 = vadd.xlane.f32.xlu0 %v79_v23  ;;  %83 = vadd.xlane.f32.xlu1 %v82_v26 }
  0xb7   :  { %86 = vadd.xlane.f32.xlu1 %v85_v27 }
 0x138   :  { %v78_v36 = vpop.xlane.xlu0 %77 }
 0x139   :  { %v88_v37 = vmul.f32 0.015625, %v78_v36 }
 0x13b   :  { %v92_v38 = vadd.f32 1e-05, %v88_v37 }
 0x13c   :  { %v84_v39 = vpop.xlane.xlu1 %83  ;;  %v81_v40 = vpop.xlane.xlu0 %80 }
 0x13d   :  { %314 = vrsqrt.f32 %v92_v38  ;;  %v90_v41 = vmul.f32 0.015625, %v84_v39  ;;  %v89_v42 = vmul.f32 0.015625, %v81_v40 }
 0x13f   :  { %v94_v43 = vadd.f32 1e-05, %v90_v41  ;;  %v93_v44 = vadd.f32 1e-05, %v89_v42 }
 0x140   :  { %v87_v45 = vpop.xlane.xlu1 %86 }
 0x141   :  { %316 = vrsqrt.f32 %v94_v43  ;;  %v91_v46 = vmul.f32 0.015625, %v87_v45 }
 0x142   :  { %318 = vrsqrt.f32 %v93_v44 }
 0x143   :  { %v95_v47 = vadd.f32 1e-05, %v91_v46 }
 0x145   :  { %320 = vrsqrt.f32 %v95_v47 }
 0x14a   :  { %v315_v48 = vpop.eup %314 }
 0x14b   :  { %v100_v50 = vmul.f32 %v315_v48, %v434_v12 }
 0x14d   :  { %v111_v52 = vmul.f32 %v253_v49, %v100_v50 }
 0x14e   :  { %v317_v53 = vpop.eup %316 }
 0x14f   :  { %v319_v54 = vpop.eup %318  ;;  %v122_v55 = vadd.f32 %v254_v51, %v111_v52  ;;  %v102_v56 = vmul.f32 %v317_v53, %v442_v20 }
 0x150   :  { %v101_v57 = vmul.f32 %v319_v54, %v436_v13 }
 0x151   :  { %287 = vmatprep.mubr.msk.f32.mxu0 %vm50_vm0, %v122_v55  ;;  %v113_v58 = vmul.f32 %v253_v49, %v102_v56 }
 0x152   :  { %v321_v59 = vpop.eup %320  ;;  %v112_v60 = vmul.f32 %v253_v49, %v101_v57 }
 0x153   :  { %v124_v61 = vadd.f32 %v254_v51, %v113_v58  ;;  %v103_v62 = vmul.f32 %v321_v59, %v444_v21 }
 0x154   :  { %v123_v63 = vadd.f32 %v254_v51, %v112_v60 }
 0x155   :  { %290 = vmatprep.mubr.msk.f32.mxu1 %vm50_vm0, %v124_v61  ;;  %v114_v0 = vmul.f32 %v253_v49, %v103_v62 }
 0x156   :  { %288 = vmatmul.mubr.msk.f32.vlgmr.msra.gmra.mxu0 %vm50_vm0, %v123_v63 }
 0x157   :  { %v125_v1 = vadd.f32 %v254_v51, %v114_v0 }
 0x159   :  { %291 = vmatmul.mubr.msk.f32.vlgmr.msra.gmra.mxu1 %vm50_vm0, %v125_v1 }
 0x216   :  { %v289_v2 = vpop.f32.mrf.mxu0 }
 0x217   :  { %232 = vst.msk [vmem:[#allocation7 + $0x8] sm:$0xff] %vm50_vm0, %v289_v2 }
 0x218   :  { %v212_v3 = vpop.f32.mrf.mxu0 }
 0x219   :  { %231 = vst.msk [vmem:[#allocation7] sm:$0xff] %vm50_vm0, %v212_v3  ;;  %v292_v4 = vpop.f32.mrf.mxu1 }
 0x21a   :  { %234 = vst.msk [vmem:[#allocation7 + $0x18] sm:$0xff] %vm50_vm0, %v292_v4 }
 0x21b   :  { %v222_v5 = vpop.f32.mrf.mxu1 }
 0x21c   :  { %233 = vst.msk [vmem:[#allocation7 + $0x10] sm:$0xff] %vm50_vm0, %v222_v5 }
 0x21d   :  { %373 = shalt.err (!%p370_p0)
}
 0x21e   :  { %246 = dma.vmem_to_hbm [thread:$0]  %s241_s2, 512, %s482_s4, [#allocation4], %s389_s18, %s389_s18, %s390_s19  }
 0x21f   :  { %386 = dma.done.wait [#allocation4], 512  }
 0x220   :  { %387 = vsyncadd [#allocation4], 4294966784 }
 0x221   :  { %250 = vsyncpa [#allocation3], 1 }
 0x222   :  { %251 = vsyncpa [#allocation6], 1 }
 0x223   :  { %252 = vsyncpa [#allocation4], 1 }

</bundles_post_ra>
